<compile_context>
chip_gen: v7x
topology: tpu7x:2x2x1
jax: 0.10.0
libtpu: 0.0.40
codegen_flags: <defaults>
</compile_context>

<pallas_src>
import functools

import jax
import jax.numpy as jnp
from jax.experimental import pallas as pl
from jax.experimental.pallas import tpu as pltpu

LANE = 128            # hidden dim padded to a multiple of the vreg lane width
SUBLANE_TILE = 16     # batch-tile granularity (safe for bf16 sublane packing)
DEFAULT_TILE_N = 256  # max rows per grid step


def _round_up(x, m):
    return (x + m - 1) // m * m


def _vmem_physical_bytes():
    """Best-effort per-TensorCore VMEM capacity (only used for budgeting)."""
    try:
        kind = jax.devices()[0].device_kind.lower()
    except Exception:
        return 64 << 20
    if "v7" in kind:
        return 64 << 20           # v7x: 64 MiB per TensorCore
    return 128 << 20              # v5e / v6e: 128 MiB


# --------------------------------------------------------------------------
# Kernels
# --------------------------------------------------------------------------
def mlp_resident_kernel(x_ref, w_in_ref, b_in_ref, w1_ref, b1_ref, w2_ref,
                        b2_ref, out_ref):
    """All weights VMEM-resident; one grid step = tile_n rows through the MLP."""
    wdt = w_in_ref.dtype
    # x is already in the weight dtype (cast in the wrapper); accumulate f32.
    h = jnp.dot(x_ref[...], w_in_ref[...],
                preferred_element_type=jnp.float32) + b_in_ref[...]

    def residual_block(l, h):
        y = jnp.dot(h.astype(wdt), w1_ref[l],
                    preferred_element_type=jnp.float32) + b1_ref[l]
        y = jnp.maximum(y, 0.0)                              # ReLU
        y = jnp.dot(y.astype(wdt), w2_ref[l],
                    preferred_element_type=jnp.float32) + b2_ref[l]
        y = jnp.maximum(y, 0.0)                              # ReLU
        return h + y                                         # residual

    n_blocks = w1_ref.shape[0]
    if n_blocks <= 8:
        # Static unroll: full scheduling freedom for a handful of blocks.
        for l in range(n_blocks):
            h = residual_block(l, h)
    else:
        # Visible loop bounds live ranges; unroll=2 overlaps VPU tail of block l
        # with the first vmatmul push of block l+1.
        h = jax.lax.fori_loop(0, n_blocks, residual_block, h, unroll=2)

    out_ref[...] = h.astype(out_ref.dtype)


def mlp_streaming_kernel(x_ref, w_in_ref, b_in_ref, w1_ref, b1_ref, w2_ref,
                         b2_ref, out_ref, h_acc):
    """Weight-streaming fallback: inner grid axis walks the residual blocks so
    only one block's (w1, w2) lives in VMEM at a time (auto double-buffered).
    The running h is carried across block steps in a VMEM scratch."""
    l = pl.program_id(1)
    wdt = w_in_ref.dtype

    @pl.when(l == 0)
    def _():
        h_acc[...] = jnp.dot(x_ref[...], w_in_ref[...],
                             preferred_element_type=jnp.float32) + b_in_ref[...]

    h = h_acc[...]
    y = jnp.dot(h.astype(wdt), w1_ref[0],
                preferred_element_type=jnp.float32) + b1_ref[0]
    y = jnp.maximum(y, 0.0)
    y = jnp.dot(y.astype(wdt), w2_ref[0],
                preferred_element_type=jnp.float32) + b2_ref[0]
    y = jnp.maximum(y, 0.0)
    h_acc[...] = h + y

    @pl.when(l == pl.num_programs(1) - 1)
    def _():
        out_ref[...] = h_acc[...].astype(out_ref.dtype)


# --------------------------------------------------------------------------
# One-time parameter preparation (hoisted out of the forward path)
# --------------------------------------------------------------------------
def prepare_params(params, weight_dtype=jnp.bfloat16):
    """Transpose (out,in)->(in,out), zero-pad c_h to a multiple of 128 and cast
    matmul weights to `weight_dtype` (use jnp.float32 for strict f32 parity).
    Biases stay f32; the kernel always accumulates in f32."""
    c_h, c_in = params["w_in"].shape
    n_blocks = params["w1"].shape[0]
    c_h_pad = _round_up(c_h, LANE)
    pad_h = c_h_pad - c_h

    w_in_t = jnp.pad(params["w_in"].T, ((0, 0), (0, pad_h)))
    b_in = jnp.pad(params["b_in"], ((0, pad_h),)).reshape(1, c_h_pad)
    w1_t = jnp.pad(jnp.transpose(params["w1"], (0, 2, 1)),
                   ((0, 0), (0, pad_h), (0, pad_h)))
    b1 = jnp.pad(params["b1"], ((0, 0), (0, pad_h))).reshape(n_blocks, 1, c_h_pad)
    w2_t = jnp.pad(jnp.transpose(params["w2"], (0, 2, 1)),
                   ((0, 0), (0, pad_h), (0, pad_h)))
    b2 = jnp.pad(params["b2"], ((0, 0), (0, pad_h))).reshape(n_blocks, 1, c_h_pad)

    return {
        "c_h": c_h,  # static: logical (unpadded) hidden width
        "w_in": w_in_t.astype(weight_dtype),
        "b_in": b_in.astype(jnp.float32),
        "w1": w1_t.astype(weight_dtype),
        "b1": b1.astype(jnp.float32),
        "w2": w2_t.astype(weight_dtype),
        "b2": b2.astype(jnp.float32),
    }


# --------------------------------------------------------------------------
# Forward wrapper
# --------------------------------------------------------------------------
@functools.partial(jax.jit, static_argnums=(7, 8))
def _mlp_forward_impl(x, w_in, b_in, w1, b1, w2, b2, c_h_out, force_streaming):
    n, c_in = x.shape
    c_h_pad = w_in.shape[1]
    n_blocks = w1.shape[0]
    w_el = jnp.dtype(w_in.dtype).itemsize
    out_dtype = jnp.float32
    out_el = 4

    # ---- batch tiling derived from the real batch --------------------------
    n_eff = max(n, 1)
    num_tiles = -(-n_eff // DEFAULT_TILE_N)
    if num_tiles == 1 and n_eff > SUBLANE_TILE:
        num_tiles = 2                    # >= 2 grid steps -> v7x megacore can shard
    tile_n = _round_up(-(-n_eff // num_tiles), SUBLANE_TILE)
    n_pad = tile_n * num_tiles

    # Pad batch + cast to weight dtype in the wrapper (halves x DMA for bf16).
    x_p = jnp.pad(x, ((0, n_pad - n), (0, 0))).astype(w_in.dtype)

    # ---- VMEM budgeting -----------------------------------------------------
    phys = _vmem_physical_bytes()
    io_bytes = 2 * tile_n * c_in * w_el + 2 * tile_n * c_h_pad * out_el  # pipelined x/out
    tmp_bytes = 4 * tile_n * c_h_pad * 4                                 # h/y temporaries
    resident_bytes = ((w_in.size + w1.size + w2.size) * w_el            # single-buffered
                      + (b_in.size + b1.size + b2.size) * 4
                      + io_bytes + tmp_bytes)
    streaming_bytes = (w_in.size * w_el + b_in.size * 4                 # resident in-layer
                       + 2 * 2 * c_h_pad * c_h_pad * w_el               # w1+w2 block x2 bufs
                       + 2 * 2 * 2 * c_h_pad * 4                        # b1+b2 block x2 bufs
                       + io_bytes + tmp_bytes
                       + tile_n * c_h_pad * 4)                          # h accumulator

    resident_budget = min(phys - (28 << 20), 100 << 20)   # ~36 MiB on v7x, 100 MiB on v5e/v6e
    use_streaming = (force_streaming or resident_bytes > resident_budget) and n_blocks > 0

    est = streaming_bytes if use_streaming else resident_bytes
    vmem_limit = int(min(max(est * 3 // 2 + (2 << 20), 32 << 20), phys - (8 << 20)))

    # ---- cost estimate ------------------------------------------------------
    flops = 2 * n_pad * c_h_pad * (c_in + 2 * n_blocks * c_h_pad)
    if use_streaming:
        bytes_accessed = (x_p.size * w_el + n_pad * c_h_pad * out_el
                          + w_in.size * w_el + b_in.size * 4
                          + num_tiles * ((w1.size + w2.size) * w_el
                                         + (b1.size + b2.size) * 4))
    else:
        bytes_accessed = (x_p.size * w_el + n_pad * c_h_pad * out_el
                          + (w_in.size + w1.size + w2.size) * w_el
                          + (b_in.size + b1.size + b2.size) * 4)
    cost = pl.CostEstimate(flops=flops, transcendentals=0,
                           bytes_accessed=bytes_accessed)

    if not use_streaming:
        # -------- all weights VMEM-resident, 1-D grid over the batch ---------
        def const_spec(arr):
            nd = arr.ndim
            return pl.BlockSpec(arr.shape, lambda i, _nd=nd: (0,) * _nd,
                                pipeline_mode=pl.Buffered(1))   # no double-buffering

        out = pl.pallas_call(
            mlp_resident_kernel,
            out_shape=jax.ShapeDtypeStruct((n_pad, c_h_pad), out_dtype),
            grid=(num_tiles,),
            in_specs=[
                pl.BlockSpec((tile_n, c_in), lambda i: (i, 0)),   # x tiled over rows
                const_spec(w_in), const_spec(b_in),
                const_spec(w1), const_spec(b1),
                const_spec(w2), const_spec(b2),
            ],
            out_specs=pl.BlockSpec((tile_n, c_h_pad), lambda i: (i, 0)),
            compiler_params=pltpu.CompilerParams(
                dimension_semantics=("parallel",),
                vmem_limit_bytes=vmem_limit),
            cost_estimate=cost,
        )(x_p, w_in, b_in, w1, b1, w2, b2)
    else:
        # -------- weight streaming: grid = (row tiles, residual blocks) ------
        out = pl.pallas_call(
            mlp_streaming_kernel,
            out_shape=jax.ShapeDtypeStruct((n_pad, c_h_pad), out_dtype),
            grid=(num_tiles, n_blocks),
            in_specs=[
                pl.BlockSpec((tile_n, c_in), lambda i, l: (i, 0)),
                pl.BlockSpec(w_in.shape, lambda i, l: (0, 0),
                             pipeline_mode=pl.Buffered(1)),
                pl.BlockSpec(b_in.shape, lambda i, l: (0, 0),
                             pipeline_mode=pl.Buffered(1)),
                pl.BlockSpec((1, c_h_pad, c_h_pad), lambda i, l: (l, 0, 0)),
                pl.BlockSpec((1, 1, c_h_pad), lambda i, l: (l, 0, 0)),
                pl.BlockSpec((1, c_h_pad, c_h_pad), lambda i, l: (l, 0, 0)),
                pl.BlockSpec((1, 1, c_h_pad), lambda i, l: (l, 0, 0)),
            ],
            out_specs=pl.BlockSpec((tile_n, c_h_pad), lambda i, l: (i, 0)),
            scratch_shapes=[pltpu.VMEM((tile_n, c_h_pad), jnp.float32)],
            compiler_params=pltpu.CompilerParams(
                dimension_semantics=("parallel", "arbitrary"),
                vmem_limit_bytes=vmem_limit),
            cost_estimate=cost,
        )(x_p, w_in, b_in, w1, b1, w2, b2)

    return out[:n, :c_h_out]


def mlp_forward(x, prep, force_streaming=False):
    """x: (N, c_in). prep: dict from prepare_params()."""
    return _mlp_forward_impl(x, prep["w_in"], prep["b_in"],
                             prep["w1"], prep["b1"], prep["w2"], prep["b2"],
                             prep["c_h"], bool(force_streaming))


# --------------------------------------------------------------------------
# Init + references
# --------------------------------------------------------------------------
def init_params(key, c_in, c_h, n_blocks):
    """Matches PyTorch nn.Linear default init (U[-1/sqrt(in), 1/sqrt(in)])."""
    ks = jax.random.split(key, 6)
    lim_in = 1.0 / jnp.sqrt(c_in)
    lim_h = 1.0 / jnp.sqrt(c_h)
    return {
        "w_in": jax.random.uniform(ks[0], (c_h, c_in), jnp.float32, -lim_in, lim_in),
        "b_in": jax.random.uniform(ks[1], (c_h,), jnp.float32, -lim_in, lim_in),
        "w1": jax.random.uniform(ks[2], (n_blocks, c_h, c_h), jnp.float32, -lim_h, lim_h),
        "b1": jax.random.uniform(ks[3], (n_blocks, c_h), jnp.float32, -lim_h, lim_h),
        "w2": jax.random.uniform(ks[4], (n_blocks, c_h, c_h), jnp.float32, -lim_h, lim_h),
        "b2": jax.random.uniform(ks[5], (n_blocks, c_h), jnp.float32, -lim_h, lim_h),
    }


def mlp_reference(x, params):
    """Pure-JAX f32 reference of the PyTorch forward."""
    h = x @ params["w_in"].T + params["b_in"]
    for l in range(params["w1"].shape[0]):
        y = jnp.maximum(h @ params["w1"][l].T + params["b1"][l], 0.0)
        y = jnp.maximum(y @ params["w2"][l].T + params["b2"][l], 0.0)
        h = h + y
    return h


def mlp_reference_bf16(x, params):
    """Reference emulating the kernel's bf16-input / f32-accumulate matmuls."""
    def mm(a, w_pt):
        return jnp.dot(a.astype(jnp.bfloat16), w_pt.T.astype(jnp.bfloat16),
                       preferred_element_type=jnp.float32)
    h = mm(x, params["w_in"]) + params["b_in"]
    for l in range(params["w1"].shape[0]):
        y = jnp.maximum(mm(h, params["w1"][l]) + params["b1"][l], 0.0)
        y = jnp.maximum(mm(y, params["w2"][l]) + params["b2"][l], 0.0)
        h = h + y
    return h


if __name__ == "__main__":
    # Small shapes consistent with the module's forward: x is (batch, c_in).
    batch, c_in, c_h, n_blocks = 8, 16, 32, 2

    key = jax.random.PRNGKey(0)
    kx, kp = jax.random.split(key)
    x = jax.random.normal(kx, (batch, c_in), jnp.float32)
    params = init_params(kp, c_in, c_h, n_blocks)

    prep = prepare_params(params)          # one-time layout/pad/cast, not per-call
    ref_bf = mlp_reference_bf16(x, params)   # same bf16-in / f32-acc math
    ref_32 = mlp_reference(x, params)        # original f32 PyTorch semantics

    # Resident-weights path (auto-selected for this small model).
    out_res = jax.block_until_ready(mlp_forward(x, prep))
    assert out_res.shape == (batch, c_h)
    assert jnp.allclose(out_res, ref_bf, atol=1e-3, rtol=1e-3)
    assert jnp.allclose(out_res, ref_32, atol=5e-2, rtol=5e-2)

    # Weight-streaming fallback path (forced, to validate it as well).
    out_str = jax.block_until_ready(mlp_forward(x, prep, force_streaming=True))
    assert out_str.shape == (batch, c_h)
    assert jnp.allclose(out_str, ref_bf, atol=1e-3, rtol=1e-3)

    # Multi-tile (grid >= 2) path with a slightly larger batch.
    x2 = jax.random.normal(kx, (40, c_in), jnp.float32)
    out2 = jax.block_until_ready(mlp_forward(x2, prep))
    assert out2.shape == (40, c_h)
    assert jnp.allclose(out2, mlp_reference_bf16(x2, params), atol=1e-3, rtol=1e-3)

    print("KERNEL_OK")
</pallas_src>

<mosaic_0001>
module attributes {stable_mosaic.version = 11 : i64} {
  func.func @mlp_resident_kernel(%arg0: i32, %arg1: memref<16x16xbf16, #tpu.memory_space<vmem>>, %arg2: memref<16x128xbf16, #tpu.memory_space<vmem>>, %arg3: memref<1x128xf32, #tpu.memory_space<vmem>>, %arg4: memref<2x128x128xbf16, #tpu.memory_space<vmem>>, %arg5: memref<2x1x128xf32, #tpu.memory_space<vmem>>, %arg6: memref<2x128x128xbf16, #tpu.memory_space<vmem>>, %arg7: memref<2x1x128xf32, #tpu.memory_space<vmem>>, %arg8: memref<16x128xf32, #tpu.memory_space<vmem>>) attributes {dimension_semantics = [#tpu.dimension_semantics<parallel>], iteration_bounds = array<i64: 1>, scalar_prefetch = 0 : i64, scratch_operands = 0 : i64, tpu.core_type = #tpu.core_type<tc>, window_params = [{transform_indices = @transform_0, window_bounds = array<i64: 16, 16>}, {pipeline_mode = #tpu.pipeline_mode<synchronous>, transform_indices = @transform_1, window_bounds = array<i64: 16, 128>}, {pipeline_mode = #tpu.pipeline_mode<synchronous>, transform_indices = @transform_2, window_bounds = array<i64: 1, 128>}, {pipeline_mode = #tpu.pipeline_mode<synchronous>, transform_indices = @transform_3, window_bounds = array<i64: 2, 128, 128>}, {pipeline_mode = #tpu.pipeline_mode<synchronous>, transform_indices = @transform_4, window_bounds = array<i64: 2, 1, 128>}, {pipeline_mode = #tpu.pipeline_mode<synchronous>, transform_indices = @transform_5, window_bounds = array<i64: 2, 128, 128>}, {pipeline_mode = #tpu.pipeline_mode<synchronous>, transform_indices = @transform_6, window_bounds = array<i64: 2, 1, 128>}, {transform_indices = @transform_7, window_bounds = array<i64: 16, 128>}]} {
    %c0 = arith.constant 0 : index
    %c0_0 = arith.constant 0 : index
    %0 = vector.load %arg1[%c0, %c0_0] : memref<16x16xbf16, #tpu.memory_space<vmem>>, vector<16x16xbf16>
    %c0_1 = arith.constant 0 : index
    %c0_2 = arith.constant 0 : index
    %1 = vector.load %arg2[%c0_1, %c0_2] : memref<16x128xbf16, #tpu.memory_space<vmem>>, vector<16x128xbf16>
    %cst = arith.constant dense<0.000000e+00> : vector<16x128xf32>
    %2 = tpu.matmul %0, %1, %cst {dimension_numbers = #tpu.dot_dimension_numbers<[1], [0], [0], [1], [0, 0, 1, 1], [], []>} : vector<16x16xbf16>, vector<16x128xbf16>, vector<16x128xf32> -> vector<16x128xf32>
    %c0_3 = arith.constant 0 : index
    %c0_4 = arith.constant 0 : index
    %3 = vector.load %arg3[%c0_3, %c0_4] : memref<1x128xf32, #tpu.memory_space<vmem>>, vector<1x128xf32>
    %4 = vector.broadcast %3 : vector<1x128xf32> to vector<16x128xf32>
    %5 = arith.addf %2, %4 : vector<16x128xf32>
    %6 = arith.truncf %5 : vector<16x128xf32> to vector<16x128xbf16>
    %c0_5 = arith.constant 0 : index
    %c0_6 = arith.constant 0 : index
    %c0_7 = arith.constant 0 : index
    %7 = vector.load %arg4[%c0_5, %c0_6, %c0_7] : memref<2x128x128xbf16, #tpu.memory_space<vmem>>, vector<1x128x128xbf16>
    %8 = vector.shape_cast %7 : vector<1x128x128xbf16> to vector<128x128xbf16>
    %cst_8 = arith.constant dense<0.000000e+00> : vector<16x128xf32>
    %9 = tpu.matmul %6, %8, %cst_8 {dimension_numbers = #tpu.dot_dimension_numbers<[1], [0], [0], [1], [0, 0, 1, 1], [], []>} : vector<16x128xbf16>, vector<128x128xbf16>, vector<16x128xf32> -> vector<16x128xf32>
    %c0_9 = arith.constant 0 : index
    %c0_10 = arith.constant 0 : index
    %c0_11 = arith.constant 0 : index
    %10 = vector.load %arg5[%c0_9, %c0_10, %c0_11] : memref<2x1x128xf32, #tpu.memory_space<vmem>>, vector<1x1x128xf32>
    %11 = vector.shape_cast %10 : vector<1x1x128xf32> to vector<1x128xf32>
    %12 = vector.broadcast %11 : vector<1x128xf32> to vector<16x128xf32>
    %13 = arith.addf %9, %12 : vector<16x128xf32>
    %cst_12 = arith.constant 0.000000e+00 : f32
    %14 = vector.broadcast %cst_12 : f32 to vector<16x128xf32>
    %15 = arith.maximumf %13, %14 : vector<16x128xf32>
    %16 = arith.truncf %15 : vector<16x128xf32> to vector<16x128xbf16>
    %c0_13 = arith.constant 0 : index
    %c0_14 = arith.constant 0 : index
    %c0_15 = arith.constant 0 : index
    %17 = vector.load %arg6[%c0_13, %c0_14, %c0_15] : memref<2x128x128xbf16, #tpu.memory_space<vmem>>, vector<1x128x128xbf16>
    %18 = vector.shape_cast %17 : vector<1x128x128xbf16> to vector<128x128xbf16>
    %cst_16 = arith.constant dense<0.000000e+00> : vector<16x128xf32>
    %19 = tpu.matmul %16, %18, %cst_16 {dimension_numbers = #tpu.dot_dimension_numbers<[1], [0], [0], [1], [0, 0, 1, 1], [], []>} : vector<16x128xbf16>, vector<128x128xbf16>, vector<16x128xf32> -> vector<16x128xf32>
    %c0_17 = arith.constant 0 : index
    %c0_18 = arith.constant 0 : index
    %c0_19 = arith.constant 0 : index
    %20 = vector.load %arg7[%c0_17, %c0_18, %c0_19] : memref<2x1x128xf32, #tpu.memory_space<vmem>>, vector<1x1x128xf32>
    %21 = vector.shape_cast %20 : vector<1x1x128xf32> to vector<1x128xf32>
    %22 = vector.broadcast %21 : vector<1x128xf32> to vector<16x128xf32>
    %23 = arith.addf %19, %22 : vector<16x128xf32>
    %cst_20 = arith.constant 0.000000e+00 : f32
    %24 = vector.broadcast %cst_20 : f32 to vector<16x128xf32>
    %25 = arith.maximumf %23, %24 : vector<16x128xf32>
    %26 = arith.addf %5, %25 : vector<16x128xf32>
    %27 = arith.truncf %26 : vector<16x128xf32> to vector<16x128xbf16>
    %c1 = arith.constant 1 : index
    %c0_21 = arith.constant 0 : index
    %c0_22 = arith.constant 0 : index
    %28 = vector.load %arg4[%c1, %c0_21, %c0_22] : memref<2x128x128xbf16, #tpu.memory_space<vmem>>, vector<1x128x128xbf16>
    %29 = vector.shape_cast %28 : vector<1x128x128xbf16> to vector<128x128xbf16>
    %cst_23 = arith.constant dense<0.000000e+00> : vector<16x128xf32>
    %30 = tpu.matmul %27, %29, %cst_23 {dimension_numbers = #tpu.dot_dimension_numbers<[1], [0], [0], [1], [0, 0, 1, 1], [], []>} : vector<16x128xbf16>, vector<128x128xbf16>, vector<16x128xf32> -> vector<16x128xf32>
    %c1_24 = arith.constant 1 : index
    %c0_25 = arith.constant 0 : index
    %c0_26 = arith.constant 0 : index
    %31 = vector.load %arg5[%c1_24, %c0_25, %c0_26] : memref<2x1x128xf32, #tpu.memory_space<vmem>>, vector<1x1x128xf32>
    %32 = vector.shape_cast %31 : vector<1x1x128xf32> to vector<1x128xf32>
    %33 = vector.broadcast %32 : vector<1x128xf32> to vector<16x128xf32>
    %34 = arith.addf %30, %33 : vector<16x128xf32>
    %cst_27 = arith.constant 0.000000e+00 : f32
    %35 = vector.broadcast %cst_27 : f32 to vector<16x128xf32>
    %36 = arith.maximumf %34, %35 : vector<16x128xf32>
    %37 = arith.truncf %36 : vector<16x128xf32> to vector<16x128xbf16>
    %c1_28 = arith.constant 1 : index
    %c0_29 = arith.constant 0 : index
    %c0_30 = arith.constant 0 : index
    %38 = vector.load %arg6[%c1_28, %c0_29, %c0_30] : memref<2x128x128xbf16, #tpu.memory_space<vmem>>, vector<1x128x128xbf16>
    %39 = vector.shape_cast %38 : vector<1x128x128xbf16> to vector<128x128xbf16>
    %cst_31 = arith.constant dense<0.000000e+00> : vector<16x128xf32>
    %40 = tpu.matmul %37, %39, %cst_31 {dimension_numbers = #tpu.dot_dimension_numbers<[1], [0], [0], [1], [0, 0, 1, 1], [], []>} : vector<16x128xbf16>, vector<128x128xbf16>, vector<16x128xf32> -> vector<16x128xf32>
    %c1_32 = arith.constant 1 : index
    %c0_33 = arith.constant 0 : index
    %c0_34 = arith.constant 0 : index
    %41 = vector.load %arg7[%c1_32, %c0_33, %c0_34] : memref<2x1x128xf32, #tpu.memory_space<vmem>>, vector<1x1x128xf32>
    %42 = vector.shape_cast %41 : vector<1x1x128xf32> to vector<1x128xf32>
    %43 = vector.broadcast %42 : vector<1x128xf32> to vector<16x128xf32>
    %44 = arith.addf %40, %43 : vector<16x128xf32>
    %cst_35 = arith.constant 0.000000e+00 : f32
    %45 = vector.broadcast %cst_35 : f32 to vector<16x128xf32>
    %46 = arith.maximumf %44, %45 : vector<16x128xf32>
    %47 = arith.addf %26, %46 : vector<16x128xf32>
    %c0_36 = arith.constant 0 : index
    %c0_37 = arith.constant 0 : index
    %48 = vector.load %arg8[%c0_36, %c0_37] : memref<16x128xf32, #tpu.memory_space<vmem>>, vector<16x128xf32>
    tpu.vector_store %arg8[%c0_36, %c0_37], %47 {strides = array<i32>} : memref<16x128xf32, #tpu.memory_space<vmem>>, vector<16x128xf32>,
    return
  }
  func.func @transform_0(%arg0: i32) -> (i32, i32) {
    %c0_i32 = arith.constant 0 : i32
    %c0_i32_0 = arith.constant 0 : i32
    return %arg0, %c0_i32 : i32, i32
  }
  func.func @transform_1(%arg0: i32) -> (i32, i32) {
    %c0_i32 = arith.constant 0 : i32
    %c0_i32_0 = arith.constant 0 : i32
    %c0_i32_1 = arith.constant 0 : i32
    return %c0_i32, %c0_i32_0 : i32, i32
  }
  func.func @transform_2(%arg0: i32) -> (i32, i32) {
    %c0_i32 = arith.constant 0 : i32
    %c0_i32_0 = arith.constant 0 : i32
    %c0_i32_1 = arith.constant 0 : i32
    return %c0_i32, %c0_i32_0 : i32, i32
  }
  func.func @transform_3(%arg0: i32) -> (i32, i32, i32) {
    %c0_i32 = arith.constant 0 : i32
    %c0_i32_0 = arith.constant 0 : i32
    %c0_i32_1 = arith.constant 0 : i32
    %c0_i32_2 = arith.constant 0 : i32
    return %c0_i32, %c0_i32_0, %c0_i32_1 : i32, i32, i32
  }
  func.func @transform_4(%arg0: i32) -> (i32, i32, i32) {
    %c0_i32 = arith.constant 0 : i32
    %c0_i32_0 = arith.constant 0 : i32
    %c0_i32_1 = arith.constant 0 : i32
    %c0_i32_2 = arith.constant 0 : i32
    return %c0_i32, %c0_i32_0, %c0_i32_1 : i32, i32, i32
  }
  func.func @transform_5(%arg0: i32) -> (i32, i32, i32) {
    %c0_i32 = arith.constant 0 : i32
    %c0_i32_0 = arith.constant 0 : i32
    %c0_i32_1 = arith.constant 0 : i32
    %c0_i32_2 = arith.constant 0 : i32
    return %c0_i32, %c0_i32_0, %c0_i32_1 : i32, i32, i32
  }
  func.func @transform_6(%arg0: i32) -> (i32, i32, i32) {
    %c0_i32 = arith.constant 0 : i32
    %c0_i32_0 = arith.constant 0 : i32
    %c0_i32_1 = arith.constant 0 : i32
    %c0_i32_2 = arith.constant 0 : i32
    return %c0_i32, %c0_i32_0, %c0_i32_1 : i32, i32, i32
  }
  func.func @transform_7(%arg0: i32) -> (i32, i32) {
    %c0_i32 = arith.constant 0 : i32
    %c0_i32_0 = arith.constant 0 : i32
    return %arg0, %c0_i32 : i32, i32
  }
}

</mosaic_0001>

<bundles_post_ra>
// kernel: _mlp_forward_impl.1
= control target key start
LH: loop header
LB: loop body
LE: loop exit
PB: predicated region body
PF: predicated region fallthrough
CT: control target
= control target key end

     0   :  { %12 = vsyncpa [#allocation3], 0  ;;  %s1000_s0 = inlined_call_operand.vmem [shape: bf16[16,16], index: 0, kind: input, shape index: {}]   ;;  %s1001_s1 = inlined_call_operand.vmem [shape: bf16[16,128], index: 1, kind: input, shape index: {}]   ;;  %s1002_s2 = inlined_call_operand.vmem [shape: f32[1,128], index: 2, kind: input, shape index: {}]   ;;  %s1003_s3 = inlined_call_operand.hbm [shape: bf16[2,128,128], index: 3, kind: input, shape index: {}]   ;;  %s1004_s4 = inlined_call_operand.vmem [shape: f32[2,1,128], index: 4, kind: input, shape index: {}]   ;;  %s1005_s5 = inlined_call_operand.hbm [shape: bf16[2,128,128], index: 5, kind: input, shape index: {}]   ;;  %s1006_s6 = inlined_call_operand.vmem [shape: f32[2,1,128], index: 6, kind: input, shape index: {}]   ;;  %s1007_s7 = inlined_call_operand.vmem [shape: f32[16,128], index: 7, kind: output, shape index: {}]  }
   0x1   :  { %13 = vsyncpa [#allocation5], 0  ;;  %s852_s24 = smov [#allocation2]   ;;  %s804_s28 = scalar_lea.hbm %s1003_s3, 2048 }
   0x2   :  { %s25_s25 = sshll.u32 %s852_s24, 4  ;;  %p805_p0 = scmp.ne.s32.totalorder %s1003_s3, %s804_s28  ;;  %s26_s25 = int_to_ptr.vmem [resolvable:$true] %s25_s25 }
   0x3   :  { %p808_p1 = scmp.lt.u32.totalorder %s804_s28, %s1003_s3 }
   0x5   :  { %p810_p2 = pnand %p808_p1, %p805_p0 }
   0x7   :  { %813 = shalt.err (!%p810_p2)
}
   0x8   :  { %s814_s10 = scalar_lea.vmem %s26_s25, 2048  ;;  %p819_p4 = scmp.lt.s32.totalorder %s26_s25, %s26_s25 }
   0x9   :  { %p815_p3 = scmp.ne.s32.totalorder %s26_s25, %s814_s10  ;;  %p820_p5 = scmp.lt.s32.totalorder %s814_s10, %s814_s10 }
   0xb   :  { %p821_p6 = por %p820_p5, %p819_p4 }
   0xd   :  { %p822_p7 = pnand %p821_p6, %p815_p3 }
   0xf   :  { %825 = shalt.err (!%p822_p7)
}
  0x10   :  { %s853_s11 = smov 64   ;;  %s854_s12 = smov 4  }
  0x11   :  { %31 = dma.hbm_to_vmem [thread:$0]  %s1003_s3, 2048, %s26_s25, [#allocation3], %s853_s11, %s853_s11, %s854_s12  }
  0x12   :  { %s855_s15 = smov [#allocation4]   ;;  %s826_s19 = scalar_lea.hbm %s1005_s5, 2048 }
  0x13   :  { %s39_s16 = sshll.u32 %s855_s15, 4  ;;  %p827_p8 = scmp.ne.s32.totalorder %s1005_s5, %s826_s19  ;;  %s40_s16 = int_to_ptr.vmem [resolvable:$true] %s39_s16 }
  0x14   :  { %p830_p9 = scmp.lt.u32.totalorder %s826_s19, %s1005_s5 }
  0x16   :  { %p832_p10 = pnand %p830_p9, %p827_p8 }
  0x18   :  { %835 = shalt.err (!%p832_p10)
}
  0x19   :  { %s836_s24 = scalar_lea.vmem %s40_s16, 2048  ;;  %p841_p12 = scmp.lt.s32.totalorder %s40_s16, %s40_s16 }
  0x1a   :  { %p837_p11 = scmp.ne.s32.totalorder %s40_s16, %s836_s24  ;;  %p842_p13 = scmp.lt.s32.totalorder %s836_s24, %s836_s24 }
  0x1c   :  { %p843_p0 = por %p842_p13, %p841_p12 }
  0x1e   :  { %p844_p1 = pnand %p843_p0, %p837_p11 }
  0x20   :  { %847 = shalt.err (!%p844_p1)
}
  0x21   :  { %45 = dma.hbm_to_vmem [thread:$0]  %s1005_s5, 2048, %s40_s16, [#allocation5], %s853_s11, %s853_s11, %s854_s12  }
  0x22   :  { %848 = dma.done.wait [#allocation3], 2048  }
  0x23   :  { %849 = vsyncadd [#allocation3], 4294965248 }
  0x24   :  { %850 = dma.done.wait [#allocation5], 2048  }
  0x25   :  { %851 = vsyncadd [#allocation5], 4294965248  ;;  %v856_v0 = vmov 0.0   ;;  %vm857_vm0 = vmmov 0   ;;  %v770_v1 = vld [vmem:[%s1001_s1] sm:$0xff]   ;;  %vm77_vm1 = vcmask 130048  }
  0x26   :  { %678 = vmatprep.subr.bf16.mxu0 %v856_v0  ;;  %680 = vmatprep.mubr.msk.bf16.mxu0 %vm857_vm0, %v856_v0  ;;  %v771_v2 = vld [vmem:[%s1000_s0] sm:$0xff]   ;;  %v773_v4 = vld [vmem:[#allocation2 + $0x8] sm:$0xff]   ;;  %v774_v5 = vld [vmem:[#allocation2 + $0x10] sm:$0xff]  }
  0x27   :  { %684 = vmatprep.subr.bf16.mxu1 %v856_v0  ;;  %700 = vmatprep.mubr.msk.bf16.mxu1 %vm857_vm0, %v856_v0  ;;  %v772_v3 = vld [vmem:[#allocation2] sm:$0xff]   ;;  %v775_v6 = vld [vmem:[#allocation2 + $0x18] sm:$0xff]   ;;  %v777_v8 = vld [vmem:[#allocation2 + $0x28] sm:$0xff]  }
  0x28   :  { %679 = vmatpush3.bf16.msra.mxu0 %v770_v1  ;;  %685 = vmatpush3.bf16.msra.mxu1 %v772_v3  ;;  %v776_v7 = vld [vmem:[#allocation2 + $0x20] sm:$0xff]   ;;  %v778_v9 = vld [vmem:[#allocation2 + $0x30] sm:$0xff]   ;;  %v779_v10 = vld [vmem:[#allocation2 + $0x38] sm:$0xff]  }
  0x29   :  { %704 = vmatprep.subr.bf16.mxu0 %v856_v0  ;;  %686 = vmatprep.subr.bf16.mxu1 %v856_v0  ;;  %v780_v11 = vld [vmem:[#allocation4] sm:$0xff]   ;;  %v781_v12 = vld [vmem:[#allocation4 + $0x8] sm:$0xff]   ;;  %v782_v13 = vld [vmem:[#allocation4 + $0x10] sm:$0xff]  }
  0x2a   :  { %v783_v14 = vld [vmem:[#allocation4 + $0x18] sm:$0xff]   ;;  %v784_v15 = vld [vmem:[#allocation4 + $0x20] sm:$0xff]   ;;  %v785_v16 = vld [vmem:[#allocation4 + $0x28] sm:$0xff]  }
  0x2b   :  { %681 = vmatmul.mubr.msk.bf16.vlgmr.msra.gmra.mrb[0].mxu0 %vm77_vm1, %v771_v2  ;;  %v598_v17 = vld [vmem:[%s1002_s2] ss:$0 sm:$0xff]  ;;  %v786_v25 = vld [vmem:[#allocation4 + $0x30] sm:$0xff]   ;;  %v787_v26 = vld [vmem:[#allocation4 + $0x38] sm:$0xff]  }
  0x2c   :  { %720 = vmatprep.mubr.msk.bf16.mxu0 %vm857_vm0, %v856_v0  ;;  %687 = vmatpush3.bf16.msra.mxu1 %v773_v4  ;;  %v788_v27 = vld [vmem:[#allocation2 + $0x40] sm:$0xff]   ;;  %v789_v28 = vld [vmem:[#allocation2 + $0x48] sm:$0xff]   ;;  %v790_v29 = vld [vmem:[#allocation2 + $0x50] sm:$0xff]  }
  0x2d   :  { %688 = vmatprep.subr.bf16.mxu1 %v856_v0  ;;  %705 = vmatpush3.bf16.msra.mxu0 %v780_v11  ;;  %v791_v30 = vld [vmem:[#allocation2 + $0x58] sm:$0xff]   ;;  %v792_v31 = vld [vmem:[#allocation2 + $0x60] sm:$0xff]   ;;  %v793_v42 = vld [vmem:[#allocation2 + $0x68] sm:$0xff]  }
  0x2e   :  { %706 = vmatprep.subr.bf16.mxu0 %v856_v0  ;;  %v602_v32 = vld [vmem:[%s1004_s4] ss:$0 sm:$0xff]  ;;  %v794_v43 = vld [vmem:[#allocation2 + $0x70] sm:$0xff]   ;;  %v795_v44 = vld [vmem:[#allocation2 + $0x78] sm:$0xff]  }
  0x2f   :  { %v796_v45 = vld [vmem:[#allocation4 + $0x40] sm:$0xff]   ;;  %v797_v46 = vld [vmem:[#allocation4 + $0x48] sm:$0xff]   ;;  %v798_v47 = vld [vmem:[#allocation4 + $0x50] sm:$0xff]  }
  0x30   :  { %689 = vmatpush3.bf16.msra.mxu1 %v774_v5  ;;  %v799_v48 = vld [vmem:[#allocation4 + $0x58] sm:$0xff]   ;;  %v800_v49 = vld [vmem:[#allocation4 + $0x60] sm:$0xff]   ;;  %v801_v50 = vld [vmem:[#allocation4 + $0x68] sm:$0xff]  }
  0x31   :  { %690 = vmatprep.subr.bf16.mxu1 %v856_v0  ;;  %707 = vmatpush3.bf16.msra.mxu0 %v781_v12  ;;  %v611_v51 = vld [vmem:[%s1006_s6] ss:$0 sm:$0xff]  ;;  %v802_v63 = vld [vmem:[#allocation4 + $0x70] sm:$0xff]   ;;  %v803_v1 = vld [vmem:[#allocation4 + $0x78] sm:$0xff]  }
  0x32   :  { %708 = vmatprep.subr.bf16.mxu0 %v856_v0  ;;  %v621_v2 = vld [vmem:[%s1004_s4 + $0x1] ss:$0 sm:$0xff] }
  0x34   :  { %691 = vmatpush3.bf16.msra.mxu1 %v775_v6 }
  0x35   :  { %692 = vmatprep.subr.bf16.mxu1 %v856_v0  ;;  %709 = vmatpush3.bf16.msra.mxu0 %v782_v13 }
  0x36   :  { %710 = vmatprep.subr.bf16.mxu0 %v856_v0 }
  0x38   :  { %693 = vmatpush3.bf16.msra.mxu1 %v776_v7 }
  0x39   :  { %694 = vmatprep.subr.bf16.mxu1 %v856_v0  ;;  %711 = vmatpush3.bf16.msra.mxu0 %v783_v14 }
  0x3a   :  { %712 = vmatprep.subr.bf16.mxu0 %v856_v0 }
  0x3c   :  { %695 = vmatpush3.bf16.msra.mxu1 %v777_v8 }
  0x3d   :  { %696 = vmatprep.subr.bf16.mxu1 %v856_v0  ;;  %713 = vmatpush3.bf16.msra.mxu0 %v784_v15 }
  0x3e   :  { %714 = vmatprep.subr.bf16.mxu0 %v856_v0 }
  0x40   :  { %697 = vmatpush3.bf16.msra.mxu1 %v778_v9 }
  0x41   :  { %698 = vmatprep.subr.bf16.mxu1 %v856_v0  ;;  %715 = vmatpush3.bf16.msra.mxu0 %v785_v16 }
  0x42   :  { %716 = vmatprep.subr.bf16.mxu0 %v856_v0 }
  0x44   :  { %699 = vmatpush3.bf16.msra.mxu1 %v779_v10 }
  0x45   :  { %724 = vmatprep.subr.bf16.mxu1 %v856_v0  ;;  %717 = vmatpush3.bf16.msra.mxu0 %v786_v25 }
  0x46   :  { %718 = vmatprep.subr.bf16.mxu0 %v856_v0 }
  0x49   :  { %719 = vmatpush3.bf16.msra.mxu0 %v787_v26 }
  0x4a   :  { %744 = vmatprep.subr.bf16.mxu0 %v856_v0 }
  0xfe   :  { %v115_v18 = vpop.f32.mrb[0].mxu0 }
  0xff   :  { %v682_v19 = vpop.f32.mrb[1].mxu0  ;;  %v954_v21 = vadd.f32 %v598_v17, %v115_v18 }
 0x100   :  { %v118_v20 = vpop.f32.mrb[2].mxu0 }
 0x101   :  { %v956_v22 = vadd.f32 %v598_v17, %v118_v20  ;;  %v683_v23 = vpop.f32.mrb[3].mxu0 }
 0x103   :  { %v122_v24 = vpack.c.bf16 %v956_v22, %v954_v21 }
 0x105   :  { %701 = vmatmul.mubr.bf16.vlgmr.msra.gmra.mrb[0].mxu1 %v122_v24 }
 0x106   :  { %740 = vmatprep.mubr.msk.bf16.mxu1 %vm857_vm0, %v856_v0  ;;  %725 = vmatpush3.bf16.msra.mxu1 %v788_v27 }
 0x107   :  { %726 = vmatprep.subr.bf16.mxu1 %v856_v0 }
 0x10a   :  { %727 = vmatpush3.bf16.msra.mxu1 %v789_v28 }
 0x10b   :  { %728 = vmatprep.subr.bf16.mxu1 %v856_v0 }
 0x10e   :  { %729 = vmatpush3.bf16.msra.mxu1 %v790_v29 }
 0x10f   :  { %730 = vmatprep.subr.bf16.mxu1 %v856_v0 }
 0x112   :  { %731 = vmatpush3.bf16.msra.mxu1 %v791_v30 }
 0x113   :  { %732 = vmatprep.subr.bf16.mxu1 %v856_v0 }
 0x116   :  { %733 = vmatpush3.bf16.msra.mxu1 %v792_v31 }
 0x117   :  { %734 = vmatprep.subr.bf16.mxu1 %v856_v0 }
 0x11a   :  { %735 = vmatpush3.bf16.msra.mxu1 %v793_v42 }
 0x11b   :  { %736 = vmatprep.subr.bf16.mxu1 %v856_v0 }
 0x11e   :  { %737 = vmatpush3.bf16.msra.mxu1 %v794_v43 }
 0x11f   :  { %738 = vmatprep.subr.bf16.mxu1 %v856_v0 }
 0x122   :  { %739 = vmatpush3.bf16.msra.mxu1 %v795_v44 }
 0x1d8   :  { %v228_v33 = vpop.f32.mrb[0].mxu1 }
 0x1d9   :  { %v229_v34 = vadd.f32 %v602_v32, %v228_v33  ;;  %v702_v35 = vpop.f32.mrb[1].mxu1 }
 0x1da   :  { %v231_v36 = vpop.f32.mrb[2].mxu1 }
 0x1db   :  { %v232_v37 = vadd.f32 %v602_v32, %v231_v36  ;;  %v703_v38 = vpop.f32.mrb[3].mxu1  ;;  %v235_v39 = vmax.f32 %v229_v34, 0.0 }
 0x1dd   :  { %v236_v40 = vmax.f32 %v232_v37, 0.0 }
 0x1df   :  { %v237_v41 = vpack.c.bf16 %v236_v40, %v235_v39 }
 0x1e1   :  { %721 = vmatmul.mubr.bf16.vlgmr.msra.gmra.mrb[4].mxu0 %v237_v41 }
 0x1e2   :  { %760 = vmatprep.mubr.msk.bf16.mxu0 %vm857_vm0, %v856_v0  ;;  %745 = vmatpush3.bf16.msra.mxu0 %v796_v45 }
 0x1e3   :  { %746 = vmatprep.subr.bf16.mxu0 %v856_v0 }
 0x1e6   :  { %747 = vmatpush3.bf16.msra.mxu0 %v797_v46 }
 0x1e7   :  { %748 = vmatprep.subr.bf16.mxu0 %v856_v0 }
 0x1ea   :  { %749 = vmatpush3.bf16.msra.mxu0 %v798_v47 }
 0x1eb   :  { %750 = vmatprep.subr.bf16.mxu0 %v856_v0 }
 0x1ee   :  { %751 = vmatpush3.bf16.msra.mxu0 %v799_v48 }
 0x1ef   :  { %752 = vmatprep.subr.bf16.mxu0 %v856_v0 }
 0x1f2   :  { %753 = vmatpush3.bf16.msra.mxu0 %v800_v49 }
 0x1f3   :  { %754 = vmatprep.subr.bf16.mxu0 %v856_v0 }
 0x1f6   :  { %755 = vmatpush3.bf16.msra.mxu0 %v801_v50 }
 0x1f7   :  { %756 = vmatprep.subr.bf16.mxu0 %v856_v0 }
 0x1fa   :  { %757 = vmatpush3.bf16.msra.mxu0 %v802_v63 }
 0x1fb   :  { %758 = vmatprep.subr.bf16.mxu0 %v856_v0  ;;  %v631_v0 = vld [vmem:[%s1006_s6 + $0x1] ss:$0 sm:$0xff] }
 0x1fe   :  { %759 = vmatpush3.bf16.msra.mxu0 %v803_v1 }
 0x2b4   :  { %v343_v52 = vpop.f32.mrb[4].mxu0 }
 0x2b5   :  { %v344_v53 = vadd.f32 %v611_v51, %v343_v52  ;;  %v722_v54 = vpop.f32.mrb[5].mxu0 }
 0x2b6   :  { %v346_v55 = vpop.f32.mrb[6].mxu0 }
 0x2b7   :  { %v350_v56 = vmax.f32 %v344_v53, 0.0  ;;  %v347_v57 = vadd.f32 %v611_v51, %v346_v55  ;;  %v723_v58 = vpop.f32.mrb[7].mxu0 }
 0x2b9   :  { %v351_v59 = vmax.f32 %v347_v57, 0.0  ;;  %v352_v60 = vadd.f32 %v350_v56, %v954_v21 }
 0x2bb   :  { %v353_v61 = vadd.f32 %v351_v59, %v956_v22 }
 0x2bd   :  { %v354_v62 = vpack.c.bf16 %v353_v61, %v352_v60 }
 0x2bf   :  { %741 = vmatmul.mubr.bf16.vlgmr.msra.gmra.mrb[4].mxu1 %v354_v62 }
 0x392   :  { %v462_v3 = vpop.f32.mrb[4].mxu1 }
 0x393   :  { %v463_v4 = vadd.f32 %v621_v2, %v462_v3  ;;  %v742_v5 = vpop.f32.mrb[5].mxu1 }
 0x394   :  { %v465_v6 = vpop.f32.mrb[6].mxu1 }
 0x395   :  { %v466_v7 = vadd.f32 %v621_v2, %v465_v6  ;;  %v743_v8 = vpop.f32.mrb[7].mxu1  ;;  %v469_v9 = vmax.f32 %v463_v4, 0.0 }
 0x397   :  { %v470_v10 = vmax.f32 %v466_v7, 0.0 }
 0x399   :  { %v471_v11 = vpack.c.bf16 %v470_v10, %v469_v9 }
 0x39b   :  { %761 = vmatmul.mubr.bf16.vlgmr.msra.gmra.mrb[8].mxu0 %v471_v11 }
 0x46e   :  { %v579_v12 = vpop.f32.mrb[8].mxu0 }
 0x46f   :  { %v580_v13 = vadd.f32 %v631_v0, %v579_v12  ;;  %v762_v14 = vpop.f32.mrb[9].mxu0 }
 0x470   :  { %v582_v15 = vpop.f32.mrb[10].mxu0 }
 0x471   :  { %v586_v16 = vmax.f32 %v580_v13, 0.0  ;;  %v583_v17 = vadd.f32 %v631_v0, %v582_v15  ;;  %v763_v18 = vpop.f32.mrb[11].mxu0 }
 0x473   :  { %v588_v19 = vadd.f32 %v586_v16, %v352_v60  ;;  %v587_v20 = vmax.f32 %v583_v17, 0.0 }
 0x475   :  { %590 = vst [vmem:[%s1007_s7] sm:$0xff] %v588_v19  ;;  %v589_v21 = vadd.f32 %v587_v20, %v353_v61 }
 0x477   :  { %591 = vst [vmem:[%s1007_s7 + $0x8] sm:$0xff] %v589_v21 }
 0x478   :  { %596 = vsyncpa [#allocation3], 1 }
 0x479   :  { %597 = vsyncpa [#allocation5], 1 }

</bundles_post_ra>
